<compile_context>
chip_gen: v6e
topology: v6e:2x2x1
jax: 0.10.0
libtpu: 0.0.40
codegen_flags: <defaults>
</compile_context>

<pallas_src>
import jax
import jax.numpy as jnp
from jax.experimental import pallas as pl
from jax.experimental.pallas import tpu as pltpu


def _ordinal_kernel(x_even_ref, x_odd_ref, o_ref):
    # Elementwise hot path: clamp + 2-way softmax along the (even, odd) pair.
    c0 = jnp.clip(x_even_ref[...].astype(jnp.float32), 1e-08, 1e08)
    c1 = jnp.clip(x_odd_ref[...].astype(jnp.float32), 1e-08, 1e08)
    # softmax([c0, c1])[1] = exp(c1)/(exp(c0)+exp(c1)) = 1/(1+exp(c0-c1)).
    # exp overflow -> inf -> prob 0; underflow -> 0 -> prob 1 (matches reference).
    o_ref[...] = (1.0 / (1.0 + jnp.exp(c0 - c1))).astype(o_ref.dtype)


def ordinal_regression_layer(x, *, target_block_bytes=2 * 1024 * 1024):
    """x: (N, C, H, W) with C even. Returns prob of shape (N, C//2, H, W)."""
    N, C, H, W = x.shape
    assert C % 2 == 0, "channel count must be 2*ord_num"
    K = C // 2
    M = N * K
    HW = H * W
    itemsize = jnp.dtype(x.dtype).itemsize

    # --- layout glue (free contiguous reshapes on the fast path) -----------
    # Row m = (n, k); columns [0, HWp) = even-channel plane, [HWp, 2*HWp) = odd.
    HWp = ((HW + 127) // 128) * 128
    xr = x.reshape(M, 2, HW)
    if HWp != HW:
        # Off the fast path: one pad pass only if H*W is not lane-aligned.
        xr = jnp.pad(xr, ((0, 0), (0, 0), (0, HWp - HW)))
    x2d = xr.reshape(M, 2 * HWp)

    # --- block sizing -------------------------------------------------------
    # Lane block: largest multiple-of-128 divisor of HWp such that 8 rows of it
    # stay within the per-block byte budget (keeps stores unmasked, lane-dense,
    # and lets the odd plane be addressed as a whole-block column offset).
    max_lane_elems = max(128, target_block_bytes // (8 * itemsize))
    q = HWp // 128
    bw = 128
    for d in range(q, 0, -1):
        if q % d == 0 and 128 * d <= max_lane_elems:
            bw = 128 * d
            break
    nb = HWp // bw  # lane blocks per (even|odd) plane

    # Row block: multiple of the sublane packing (8 f32 / 16 bf16 / 32 int8),
    # or the full row count when everything fits in one block.
    sub = max(8, 32 // itemsize)
    if M * bw * itemsize <= target_block_bytes or M <= sub:
        bm = M
    else:
        bm = max(sub, (target_block_bytes // (bw * itemsize)) // sub * sub)
        bm = min(bm, (M // sub) * sub)

    grid = (pl.cdiv(M, bm), nb)

    # VMEM footprint: (2 input views + 1 output) x 2 pipeline buffers per block.
    block_bytes = bm * bw * itemsize
    cparams = {"dimension_semantics": ("parallel", "parallel")}
    vmem_need = 6 * block_bytes + (1 << 20)
    if vmem_need > 12 * 1024 * 1024:
        # Raise the scoped limit only when needed; keep headroom under v7x's
        # 64 MiB physical VMEM (v5e/v6e have 128 MiB physical).
        cparams["vmem_limit_bytes"] = min(vmem_need, 48 * 1024 * 1024)

    cost = pl.CostEstimate(
        flops=6 * M * HWp,                       # clamp x2, sub, add, div, cast
        transcendentals=M * HWp,                 # one exp per output element
        bytes_accessed=(2 * M * HWp + M * HWp) * itemsize,
    )

    out = pl.pallas_call(
        _ordinal_kernel,
        out_shape=jax.ShapeDtypeStruct((M, HWp), x.dtype),
        grid=grid,
        in_specs=[
            pl.BlockSpec((bm, bw), lambda i, j: (i, j)),        # even plane
            pl.BlockSpec((bm, bw), lambda i, j: (i, j + nb)),   # odd plane
        ],
        out_specs=pl.BlockSpec((bm, bw), lambda i, j: (i, j)),
        compiler_params=pltpu.CompilerParams(**cparams),
        cost_estimate=cost,
    )(x2d, x2d)   # same HBM array, two DMA views -> each byte read exactly once

    if HWp != HW:
        out = out[:, :HW]
    return out.reshape(N, K, H, W)


def _reference(x):
    # Pure-JAX reference mirroring the PyTorch forward.
    N, C, H, W = x.shape
    K = C // 2
    label_0 = x[:, 0::2, :, :].reshape(N, 1, K, H, W)
    label_1 = x[:, 1::2, :, :].reshape(N, 1, K, H, W)
    label = jnp.concatenate((label_0, label_1), axis=1)
    label = jnp.clip(label, 1e-08, 1e08)
    label_ord = jax.nn.softmax(label, axis=1)
    return label_ord[:, 1, :, :, :]


if __name__ == "__main__":
    # The module has no learnable parameters (__init__ is empty).
    key = jax.random.PRNGKey(0)
    N, C, H, W = 2, 8, 16, 16   # C = 2*ord_num, ord_num = 4
    x = jax.random.normal(key, (N, C, H, W), dtype=jnp.float32) * 3.0

    prob = ordinal_regression_layer(x)
    prob = jax.block_until_ready(prob)

    ref = _reference(x)
    assert prob.shape == (N, C // 2, H, W)
    assert jnp.allclose(prob, ref, atol=1e-5, rtol=1e-5), "mismatch vs reference"

    print("KERNEL_OK")
</pallas_src>

<mosaic_0001>
module attributes {stable_mosaic.version = 11 : i64} {
  func.func @_ordinal_kernel(%arg0: i32, %arg1: i32, %arg2: memref<8x256xf32, #tpu.memory_space<vmem>>, %arg3: memref<8x256xf32, #tpu.memory_space<vmem>>, %arg4: memref<8x256xf32, #tpu.memory_space<vmem>>) attributes {dimension_semantics = [#tpu.dimension_semantics<parallel>, #tpu.dimension_semantics<parallel>], iteration_bounds = array<i64: 1, 1>, scalar_prefetch = 0 : i64, scratch_operands = 0 : i64, tpu.core_type = #tpu.core_type<tc>, window_params = [{transform_indices = @transform_0, window_bounds = array<i64: 8, 256>}, {transform_indices = @transform_1, window_bounds = array<i64: 8, 256>}, {transform_indices = @transform_2, window_bounds = array<i64: 8, 256>}]} {
    %c0 = arith.constant 0 : index
    %c0_0 = arith.constant 0 : index
    %0 = vector.load %arg2[%c0, %c0_0] : memref<8x256xf32, #tpu.memory_space<vmem>>, vector<8x256xf32>
    %cst = arith.constant 9.99999993E-9 : f32
    %cst_1 = arith.constant 1.000000e+08 : f32
    %1 = vector.broadcast %cst : f32 to vector<8x256xf32>
    %2 = arith.maximumf %1, %0 : vector<8x256xf32>
    %3 = vector.broadcast %cst_1 : f32 to vector<8x256xf32>
    %4 = arith.minimumf %3, %2 : vector<8x256xf32>
    %c0_2 = arith.constant 0 : index
    %c0_3 = arith.constant 0 : index
    %5 = vector.load %arg3[%c0_2, %c0_3] : memref<8x256xf32, #tpu.memory_space<vmem>>, vector<8x256xf32>
    %cst_4 = arith.constant 9.99999993E-9 : f32
    %cst_5 = arith.constant 1.000000e+08 : f32
    %6 = vector.broadcast %cst_4 : f32 to vector<8x256xf32>
    %7 = arith.maximumf %6, %5 : vector<8x256xf32>
    %8 = vector.broadcast %cst_5 : f32 to vector<8x256xf32>
    %9 = arith.minimumf %8, %7 : vector<8x256xf32>
    %10 = arith.subf %4, %9 : vector<8x256xf32>
    %11 = math.exp %10 : vector<8x256xf32>
    %cst_6 = arith.constant 1.000000e+00 : f32
    %12 = vector.broadcast %cst_6 : f32 to vector<8x256xf32>
    %13 = arith.addf %12, %11 : vector<8x256xf32>
    %cst_7 = arith.constant 1.000000e+00 : f32
    %14 = vector.broadcast %cst_7 : f32 to vector<8x256xf32>
    %15 = arith.divf %14, %13 : vector<8x256xf32>
    %c0_8 = arith.constant 0 : index
    %c0_9 = arith.constant 0 : index
    %16 = vector.load %arg4[%c0_8, %c0_9] : memref<8x256xf32, #tpu.memory_space<vmem>>, vector<8x256xf32>
    tpu.vector_store %arg4[%c0_8, %c0_9], %15 {strides = array<i32>} : memref<8x256xf32, #tpu.memory_space<vmem>>, vector<8x256xf32>,
    return
  }
  func.func @transform_0(%arg0: i32, %arg1: i32) -> (i32, i32) {
    %c0_i32 = arith.constant 0 : i32
    return %arg0, %arg1 : i32, i32
  }
  func.func @transform_1(%arg0: i32, %arg1: i32) -> (i32, i32) {
    %c1_i32 = arith.constant 1 : i32
    %0 = arith.addi %arg1, %c1_i32 : i32
    %c0_i32 = arith.constant 0 : i32
    return %arg0, %0 : i32, i32
  }
  func.func @transform_2(%arg0: i32, %arg1: i32) -> (i32, i32) {
    %c0_i32 = arith.constant 0 : i32
    return %arg0, %arg1 : i32, i32
  }
}

</mosaic_0001>

<bundles_post_ra>
// kernel: tpu_custom_call.1
= control target key start
LH: loop header
LB: loop body
LE: loop exit
PB: predicated region body
PF: predicated region fallthrough
CT: control target
= control target key end

     0   :  { %7 = vsyncpa [#allocation3], 0  ;;  %s192_s0 = inlined_call_operand.hbm [shape: f32[8,512], index: 0, kind: input, shape index: {}]   ;;  %s193_s1 = inlined_call_operand.hbm [shape: f32[8,512], index: 1, kind: input, shape index: {}]   ;;  %s194_s2 = inlined_call_operand.hbm [shape: f32[8,256], index: 2, kind: output, shape index: {}]  }
   0x1   :  { %8 = vsyncpa [#allocation6], 0 }
   0x2   :  { %9 = vsyncpa [#allocation4], 0  ;;  %s84_s11 = scalar_lea.hbm %s193_s1, 256  ;;  %s165_s12 = smov [#allocation2]  }
   0x3   :  { %s16_s13 = sshll.u32 %s165_s12, 4  ;;  %s166_s14 = smov [#allocation5]   ;;  %s17_s13 = int_to_ptr.vmem [resolvable:$true] %s16_s13 }
   0x4   :  { %s30_s15 = sshll.u32 %s166_s14, 4  ;;  %s104_s16 = scalar_lea.vmem %s17_s13, 256  ;;  %s31_s15 = int_to_ptr.vmem [resolvable:$true] %s30_s15 }
   0x5   :  { %p105_p0 = scmp.ne.s32.totalorder %s17_s13, %s104_s16  ;;  %p109_p1 = scmp.lt.s32.totalorder %s17_s13, %s17_s13 }
   0x6   :  { %p110_p2 = scmp.lt.s32.totalorder %s104_s16, %s104_s16 }
   0x8   :  { %p111_p3 = por %p110_p2, %p109_p1 }
   0xa   :  { %p112_p4 = pnand %p111_p3, %p105_p0 }
   0xc   :  { %115 = shalt.err (!%p112_p4)
}
   0xd   :  { %19 = dma.hbm_to_vmem [thread:$0]  %s192_s0, 256, %s17_s13, [#allocation3]  }
   0xe   :  { %s126_s19 = scalar_lea.vmem %s31_s15, 256  ;;  %p131_p6 = scmp.lt.s32.totalorder %s31_s15, %s31_s15 }
   0xf   :  { %p127_p5 = scmp.ne.s32.totalorder %s31_s15, %s126_s19  ;;  %p132_p7 = scmp.lt.s32.totalorder %s126_s19, %s126_s19 }
  0x11   :  { %p133_p8 = por %p132_p7, %p131_p6 }
  0x13   :  { %p134_p9 = pnand %p133_p8, %p127_p5 }
  0x15   :  { %137 = shalt.err (!%p134_p9)
}
  0x16   :  { %33 = dma.hbm_to_vmem [thread:$0]  %s84_s11, 256, %s31_s15, [#allocation6]  }
  0x17   :  { %159 = dma.done.wait [#allocation3], 256  }
  0x18   :  { %160 = vsyncadd [#allocation3], 4294967040 }
  0x19   :  { %161 = dma.done.wait [#allocation6], 256  }
  0x1a   :  { %162 = vsyncadd [#allocation6], 4294967040  ;;  %v42_v0 = vld [vmem:[#allocation2] sm:$0xff]  ;;  %v48_v1 = vld [vmem:[#allocation5] sm:$0xff]  ;;  %s167_s0 = smov [#allocation7]  }
  0x1b   :  { %v43_v2 = vld [vmem:[#allocation2 + $0x8] sm:$0xff]  ;;  %v44_v3 = vmax.f32 %v42_v0, 1e-08  ;;  %v50_v4 = vmax.f32 %v48_v1, 1e-08  ;;  %v49_v6 = vld [vmem:[#allocation5 + $0x8] sm:$0xff] }
  0x1c   :  { %v45_v5 = vmax.f32 %v43_v2, 1e-08  ;;  %v51_v10 = vmax.f32 %v49_v6, 1e-08  ;;  %s74_s1 = sshll.u32 %s167_s0, 4  ;;  %s75_s1 = int_to_ptr.vmem [resolvable:$true] %s74_s1 }
  0x1d   :  { %v46_v7 = vmin.f32 %v44_v3, 1e+08  ;;  %v52_v8 = vmin.f32 %v50_v4, 1e+08  ;;  %s139_s20 = scalar_lea.vmem %s75_s1, 256  ;;  %p144_p11 = scmp.lt.s32.totalorder %s75_s1, %s75_s1 }
  0x1e   :  { %v47_v9 = vmin.f32 %v45_v5, 1e+08  ;;  %v53_v12 = vmin.f32 %v51_v10, 1e+08  ;;  %p140_p10 = scmp.ne.s32.totalorder %s75_s1, %s139_s20  ;;  %p145_p12 = scmp.lt.s32.totalorder %s139_s20, %s139_s20 }
  0x1f   :  { %v54_v11 = vsub.f32 %v46_v7, %v52_v8 }
  0x20   :  { %v55_v14 = vsub.f32 %v47_v9, %v53_v12  ;;  %p146_p13 = por %p145_p12, %p144_p11 }
  0x21   :  { %v56_v13 = vmul.f32 1.442695, %v54_v11 }
  0x22   :  { %v58_v15 = vmul.f32 1.442695, %v55_v14  ;;  %p147_p0 = pnand %p146_p13, %p140_p10 }
  0x23   :  { %88 = vpow2.f32 %v56_v13 }
  0x24   :  { %90 = vpow2.f32 %v58_v15 }
  0x30   :  { %v89_v16 = vpop.eup %88 }
  0x31   :  { %v60_v17 = vadd.f32 1.0, %v89_v16  ;;  %v91_v18 = vpop.eup %90 }
  0x32   :  { %v61_v19 = vadd.f32 1.0, %v91_v18 }
  0x33   :  { %92 = vrcp.f32 %v60_v17 }
  0x34   :  { %94 = vrcp.f32 %v61_v19 }
  0x40   :  { %v93_v20 = vpop.eup %92 }
  0x41   :  { %66 = vst [vmem:[#allocation7] sm:$0xff] %v93_v20  ;;  %v95_v21 = vpop.eup %94 }
  0x42   :  { %67 = vst [vmem:[#allocation7 + $0x8] sm:$0xff] %v95_v21 }
  0x43   :  { %150 = shalt.err (!%p147_p0)
}
  0x44   :  { %77 = dma.vmem_to_hbm [thread:$0]  %s75_s1, 256, %s194_s2, [#allocation4]  }
  0x45   :  { %163 = dma.done.wait [#allocation4], 256  }
  0x46   :  { %164 = vsyncadd [#allocation4], 4294967040 }
  0x47   :  { %81 = vsyncpa [#allocation3], 1 }
  0x48   :  { %82 = vsyncpa [#allocation6], 1 }
  0x49   :  { %83 = vsyncpa [#allocation4], 1 }

</bundles_post_ra>
